<compile_context>
chip_gen: v5e
topology: v5e:2x2
jax: 0.10.0
libtpu: 0.0.40
codegen_flags: <defaults>
</compile_context>

<pallas_src>
import jax
import jax.numpy as jnp
import numpy as np
from jax.experimental import pallas as pl
from jax.experimental.pallas import tpu as pltpu


def rawnet_kernel(xt_ref, w1t_ref, b1t_ref, w2t_ref, b2t_ref, w3t_ref, b3_ref, o_ref):
    xt = xt_ref[...]                                            # (2, TB)  f32

    # layer 1: Linear(2, H) -> tanh -> relu.
    # K=2 through the systolic array is pure MXU pipeline latency; two VPU
    # outer-product FMAs instead (hidden on sublanes, batch on lanes).
    z1 = (w1t_ref[:, 0:1] * xt[0:1, :]
          + w1t_ref[:, 1:2] * xt[1:2, :]
          + b1t_ref[...])                                       # (HP, TB)
    h1 = jnp.maximum(jnp.tanh(z1), 0.0)

    # layer 2: Linear(H, H) -> tanh -> relu, as w2^T @ h1^T on the MXU.
    z2 = jnp.dot(w2t_ref[...], h1,
                 preferred_element_type=jnp.float32) + b2t_ref[...]
    h2 = jnp.maximum(jnp.tanh(z2), 0.0)                         # (HP, TB)

    # layer 3: Linear(H, 1) -> sigmoid, as a sublane-direction weighted sum.
    # Result is already the lane-dense (1, TB) output row.
    z3 = jnp.sum(h2 * w3t_ref[...], axis=0, keepdims=True) + b3_ref[0]
    o_ref[...] = jax.nn.sigmoid(z3)


def _round_up(v, m):
    return ((v + m - 1) // m) * m


def rawnet_forward(x, params, *, tb=4096):
    """x: (B, 2) float32; params: dict of (in, out)-layout weights/biases.

    Returns (B, 1) float32 to match the PyTorch module's output shape.
    """
    B = x.shape[0]
    H = params["w1"].shape[1]
    HP = _round_up(max(H, 8), 8)        # hidden lives on sublanes: pad to 8, not 128
    ph = HP - H

    # Pre-transposed / zero-padded weights (padding is numerically inert).
    w1t = jnp.pad(params["w1"].T, ((0, ph), (0, 0)))                  # (HP, 2)
    b1t = jnp.pad(params["b1"].reshape(H, 1), ((0, ph), (0, 0)))      # (HP, 1)
    w2t = jnp.pad(params["w2"].T, ((0, ph), (0, ph)))                 # (HP, HP)
    b2t = jnp.pad(params["b2"].reshape(H, 1), ((0, ph), (0, 0)))      # (HP, 1)
    w3t = jnp.pad(params["w3"].reshape(H, 1), ((0, ph), (0, 0)))      # (HP, 1)
    b3 = params["b3"].reshape(1).astype(jnp.float32)                  # (1,) SMEM scalar

    # Batch tiling (batch sits on the lane axis):
    #   small B  -> one full-array tile (no grid overhead, any size legal);
    #   large B  -> big pipelined tiles, but keep G >= 2 so v7x's two TensorCores both get
    #               work, and keep TB a multiple of 128 so tiled blocks stay legal when G > 1.
    if B <= 128:
        TB, G = B, 1
    else:
        TB = min(tb, _round_up(-(-B // 2), 128))
        G = -(-B // TB)
    Bp = G * TB

    xt = x.T                                                          # (2, B)
    if Bp != B:
        xt = jnp.pad(xt, ((0, 0), (0, Bp - B)))

    resident = lambda shape: pl.BlockSpec(shape, lambda i: (0,) * len(shape))

    out = pl.pallas_call(
        rawnet_kernel,
        out_shape=jax.ShapeDtypeStruct((1, Bp), jnp.float32),
        grid_spec=pltpu.PrefetchScalarGridSpec(
            num_scalar_prefetch=0,
            grid=(G,),
            in_specs=[
                pl.BlockSpec((2, TB), lambda i: (0, i)),              # x^T tile, pipelined
                resident((HP, 2)),                                    # w1^T
                resident((HP, 1)),                                    # b1
                resident((HP, HP)),                                   # w2^T
                resident((HP, 1)),                                    # b2
                resident((HP, 1)),                                    # w3
                pl.BlockSpec(memory_space=pltpu.MemorySpace.SMEM),    # b3 scalar
            ],
            out_specs=pl.BlockSpec((1, TB), lambda i: (0, i)),        # lane-dense output row
        ),
        compiler_params=pltpu.CompilerParams(
            dimension_semantics=("parallel",),          # shards batch tiles across v7x cores
            vmem_limit_bytes=32 * 1024 * 1024,          # explicit, same on v5e/v6e/v7x
        ),
        cost_estimate=pl.CostEstimate(
            flops=2 * B * H * (H + 3),
            transcendentals=B * (2 * H + 1),
            bytes_accessed=4 * (3 * B + H * H + 5 * H + 1),
        ),
    )(xt, w1t, b1t, w2t, b2t, w3t, b3)

    return out[0, :B].reshape(B, 1)


def init_params(key, num_hid):
    """Deterministic init matching nn.Linear shapes.
    PyTorch stores weight as (out, in); we keep the (in, out) layout here."""
    ks = jax.random.split(key, 6)

    def linear(kw, kb, fan_in, fan_out):
        bound = 1.0 / np.sqrt(fan_in)
        w = jax.random.uniform(kw, (fan_in, fan_out), jnp.float32, -bound, bound)
        b = jax.random.uniform(kb, (1, fan_out), jnp.float32, -bound, bound)
        return w, b

    w1, b1 = linear(ks[0], ks[1], 2, num_hid)
    w2, b2 = linear(ks[2], ks[3], num_hid, num_hid)
    w3, b3 = linear(ks[4], ks[5], num_hid, 1)
    return {"w1": w1, "b1": b1, "w2": w2, "b2": b2,
            "w3": w3, "b3": b3.reshape(1)}


def rawnet_reference(x, p):
    h1 = jnp.maximum(jnp.tanh(x @ p["w1"] + p["b1"]), 0.0)
    h2 = jnp.maximum(jnp.tanh(h1 @ p["w2"] + p["b2"]), 0.0)
    return jax.nn.sigmoid(h2 @ p["w3"] + p["b3"])


if __name__ == "__main__":
    num_hid = 32
    batch = 8

    key = jax.random.PRNGKey(0)
    k_x, k_p, k_x2 = jax.random.split(key, 3)
    params = init_params(k_p, num_hid)

    # Small-batch case: single full-array tile.
    x = jax.random.normal(k_x, (batch, 2), dtype=jnp.float32)
    out = jax.block_until_ready(rawnet_forward(x, params))
    ref = rawnet_reference(x, params)
    assert out.shape == (batch, 1)
    np.testing.assert_allclose(np.asarray(out), np.asarray(ref), rtol=1e-5, atol=1e-5)

    # Larger, non-multiple batch exercises the pipelined grid (G=2) + batch-padding path.
    big_batch = 1000
    x_big = jax.random.normal(k_x2, (big_batch, 2), dtype=jnp.float32)
    out_big = jax.block_until_ready(rawnet_forward(x_big, params))
    ref_big = rawnet_reference(x_big, params)
    assert out_big.shape == (big_batch, 1)
    np.testing.assert_allclose(np.asarray(out_big), np.asarray(ref_big),
                               rtol=1e-5, atol=1e-5)

    print("KERNEL_OK")
</pallas_src>

<mosaic_0001>
module attributes {stable_mosaic.version = 11 : i64} {
  func.func @rawnet_kernel(%arg0: i32, %arg1: memref<2x8xf32, #tpu.memory_space<vmem>>, %arg2: memref<32x2xf32, #tpu.memory_space<vmem>>, %arg3: memref<32x1xf32, #tpu.memory_space<vmem>>, %arg4: memref<32x32xf32, #tpu.memory_space<vmem>>, %arg5: memref<32x1xf32, #tpu.memory_space<vmem>>, %arg6: memref<32x1xf32, #tpu.memory_space<vmem>>, %arg7: memref<1xf32, #tpu.memory_space<smem>>, %arg8: memref<1x8xf32, #tpu.memory_space<vmem>>) attributes {dimension_semantics = [#tpu.dimension_semantics<parallel>], iteration_bounds = array<i64: 1>, scalar_prefetch = 0 : i64, scratch_operands = 0 : i64, tpu.core_type = #tpu.core_type<tc>, window_params = [{transform_indices = @transform_0, window_bounds = array<i64: 2, 8>}, {pipeline_mode = #tpu.pipeline_mode<synchronous>, transform_indices = @transform_1, window_bounds = array<i64: 32, 2>}, {pipeline_mode = #tpu.pipeline_mode<synchronous>, transform_indices = @transform_2, window_bounds = array<i64: 32, 1>}, {pipeline_mode = #tpu.pipeline_mode<synchronous>, transform_indices = @transform_3, window_bounds = array<i64: 32, 32>}, {pipeline_mode = #tpu.pipeline_mode<synchronous>, transform_indices = @transform_4, window_bounds = array<i64: 32, 1>}, {pipeline_mode = #tpu.pipeline_mode<synchronous>, transform_indices = @transform_5, window_bounds = array<i64: 32, 1>}, {transform_indices = @transform_6, window_bounds = array<i64: 1>}, {transform_indices = @transform_7, window_bounds = array<i64: 1, 8>}]} {
    %c0 = arith.constant 0 : index
    %c0_0 = arith.constant 0 : index
    %0 = vector.load %arg1[%c0, %c0_0] : memref<2x8xf32, #tpu.memory_space<vmem>>, vector<2x8xf32>
    %c0_1 = arith.constant 0 : index
    %c0_2 = arith.constant 0 : index
    %1 = vector.load %arg2[%c0_1, %c0_2] : memref<32x2xf32, #tpu.memory_space<vmem>>, vector<32x1xf32>
    %2 = vector.extract_strided_slice %0 {offsets = [0, 0], sizes = [1, 8], strides = [1, 1]} : vector<2x8xf32> to vector<1x8xf32>
    %3 = vector.broadcast %1 : vector<32x1xf32> to vector<32x8xf32>
    %4 = vector.broadcast %2 : vector<1x8xf32> to vector<32x8xf32>
    %5 = arith.mulf %3, %4 : vector<32x8xf32>
    %c0_3 = arith.constant 0 : index
    %c1 = arith.constant 1 : index
    %6 = vector.load %arg2[%c0_3, %c1] : memref<32x2xf32, #tpu.memory_space<vmem>>, vector<32x1xf32>
    %7 = vector.extract_strided_slice %0 {offsets = [1, 0], sizes = [1, 8], strides = [1, 1]} : vector<2x8xf32> to vector<1x8xf32>
    %8 = vector.broadcast %6 : vector<32x1xf32> to vector<32x8xf32>
    %9 = vector.broadcast %7 : vector<1x8xf32> to vector<32x8xf32>
    %10 = arith.mulf %8, %9 : vector<32x8xf32>
    %11 = arith.addf %5, %10 : vector<32x8xf32>
    %c0_4 = arith.constant 0 : index
    %c0_5 = arith.constant 0 : index
    %12 = vector.load %arg3[%c0_4, %c0_5] : memref<32x1xf32, #tpu.memory_space<vmem>>, vector<32x1xf32>
    %13 = vector.broadcast %12 : vector<32x1xf32> to vector<32x8xf32>
    %14 = arith.addf %11, %13 : vector<32x8xf32>
    %15 = math.tanh %14 : vector<32x8xf32>
    %cst = arith.constant 0.000000e+00 : f32
    %16 = vector.broadcast %cst : f32 to vector<32x8xf32>
    %17 = arith.maximumf %15, %16 : vector<32x8xf32>
    %c0_6 = arith.constant 0 : index
    %c0_7 = arith.constant 0 : index
    %18 = vector.load %arg4[%c0_6, %c0_7] : memref<32x32xf32, #tpu.memory_space<vmem>>, vector<32x32xf32>
    %cst_8 = arith.constant dense<0.000000e+00> : vector<32x8xf32>
    %19 = tpu.matmul %18, %17, %cst_8 {dimension_numbers = #tpu.dot_dimension_numbers<[1], [0], [0], [1], [0, 0, 1, 1], [], []>} : vector<32x32xf32>, vector<32x8xf32>, vector<32x8xf32> -> vector<32x8xf32>
    %c0_9 = arith.constant 0 : index
    %c0_10 = arith.constant 0 : index
    %20 = vector.load %arg5[%c0_9, %c0_10] : memref<32x1xf32, #tpu.memory_space<vmem>>, vector<32x1xf32>
    %21 = vector.broadcast %20 : vector<32x1xf32> to vector<32x8xf32>
    %22 = arith.addf %19, %21 : vector<32x8xf32>
    %23 = math.tanh %22 : vector<32x8xf32>
    %cst_11 = arith.constant 0.000000e+00 : f32
    %24 = vector.broadcast %cst_11 : f32 to vector<32x8xf32>
    %25 = arith.maximumf %23, %24 : vector<32x8xf32>
    %c0_12 = arith.constant 0 : index
    %c0_13 = arith.constant 0 : index
    %26 = vector.load %arg6[%c0_12, %c0_13] : memref<32x1xf32, #tpu.memory_space<vmem>>, vector<32x1xf32>
    %27 = vector.broadcast %26 : vector<32x1xf32> to vector<32x8xf32>
    %28 = arith.mulf %25, %27 : vector<32x8xf32>
    %cst_14 = arith.constant dense<0.000000e+00> : vector<8xf32>
    %29 = vector.multi_reduction <add>, %28, %cst_14 [0] : vector<32x8xf32> to vector<8xf32>
    %30 = vector.shape_cast %29 : vector<8xf32> to vector<1x8xf32>
    %c0_15 = arith.constant 0 : index
    %31 = memref.load %arg7[%c0_15] : memref<1xf32, #tpu.memory_space<smem>>
    %32 = vector.broadcast %31 : f32 to vector<1x8xf32>
    %33 = arith.addf %30, %32 : vector<1x8xf32>
    %34 = arith.negf %33 : vector<1x8xf32>
    %35 = math.exp %34 : vector<1x8xf32>
    %cst_16 = arith.constant 1.000000e+00 : f32
    %36 = vector.broadcast %cst_16 : f32 to vector<1x8xf32>
    %37 = arith.addf %36, %35 : vector<1x8xf32>
    %38 = arith.divf %36, %37 : vector<1x8xf32>
    %c0_17 = arith.constant 0 : index
    %c0_18 = arith.constant 0 : index
    %39 = vector.load %arg8[%c0_17, %c0_18] : memref<1x8xf32, #tpu.memory_space<vmem>>, vector<1x8xf32>
    tpu.vector_store %arg8[%c0_17, %c0_18], %38 {strides = array<i32>} : memref<1x8xf32, #tpu.memory_space<vmem>>, vector<1x8xf32>,
    return
  }
  func.func @transform_0(%arg0: i32) -> (i32, i32) {
    %c0_i32 = arith.constant 0 : i32
    %c0_i32_0 = arith.constant 0 : i32
    return %c0_i32, %arg0 : i32, i32
  }
  func.func @transform_1(%arg0: i32) -> (i32, i32) {
    %c0_i32 = arith.constant 0 : i32
    %c0_i32_0 = arith.constant 0 : i32
    %c0_i32_1 = arith.constant 0 : i32
    return %c0_i32, %c0_i32_0 : i32, i32
  }
  func.func @transform_2(%arg0: i32) -> (i32, i32) {
    %c0_i32 = arith.constant 0 : i32
    %c0_i32_0 = arith.constant 0 : i32
    %c0_i32_1 = arith.constant 0 : i32
    return %c0_i32, %c0_i32_0 : i32, i32
  }
  func.func @transform_3(%arg0: i32) -> (i32, i32) {
    %c0_i32 = arith.constant 0 : i32
    %c0_i32_0 = arith.constant 0 : i32
    %c0_i32_1 = arith.constant 0 : i32
    return %c0_i32, %c0_i32_0 : i32, i32
  }
  func.func @transform_4(%arg0: i32) -> (i32, i32) {
    %c0_i32 = arith.constant 0 : i32
    %c0_i32_0 = arith.constant 0 : i32
    %c0_i32_1 = arith.constant 0 : i32
    return %c0_i32, %c0_i32_0 : i32, i32
  }
  func.func @transform_5(%arg0: i32) -> (i32, i32) {
    %c0_i32 = arith.constant 0 : i32
    %c0_i32_0 = arith.constant 0 : i32
    %c0_i32_1 = arith.constant 0 : i32
    return %c0_i32, %c0_i32_0 : i32, i32
  }
  func.func @transform_6(%arg0: i32) -> i32 {
    %c0_i32 = arith.constant 0 : i32
    %c0_i32_0 = arith.constant 0 : i32
    return %c0_i32 : i32
  }
  func.func @transform_7(%arg0: i32) -> (i32, i32) {
    %c0_i32 = arith.constant 0 : i32
    %c0_i32_0 = arith.constant 0 : i32
    return %c0_i32, %arg0 : i32, i32
  }
}

</mosaic_0001>

<bundles_post_ra>
// kernel: tpu_custom_call.1
= control target key start
LH: loop header
LB: loop body
LE: loop exit
PB: predicated region body
PF: predicated region fallthrough
CT: control target
= control target key end

     0   :  { %v354_v3 = vmov 0   ;;  %s466_s0 = inlined_call_operand.vmem [shape: f32[2,8], index: 0, kind: input, shape index: {}]   ;;  %s467_s1 = inlined_call_operand.vmem [shape: f32[32,2], index: 1, kind: input, shape index: {}]   ;;  %s468_s2 = inlined_call_operand.vmem [shape: f32[32,1], index: 2, kind: input, shape index: {}]   ;;  %s469_s3 = inlined_call_operand.vmem [shape: f32[32,32], index: 3, kind: input, shape index: {}]   ;;  %s470_s4 = inlined_call_operand.vmem [shape: f32[32,1], index: 4, kind: input, shape index: {}]   ;;  %s471_s5 = inlined_call_operand.vmem [shape: f32[32,1], index: 5, kind: input, shape index: {}]   ;;  %s472_s6 = inlined_call_operand.<no memory space> [shape: f32[1], index: 6, kind: input, shape index: {}]   ;;  %s473_s7 = inlined_call_operand.hbm [shape: f32[1,8], index: 7, kind: output, shape index: {}]  }
   0x1   :  { %v32_v0 = vld [vmem:[%s467_s1 + $0x18] sm:$0xff]  ;;  %v31_v1 = vld [vmem:[%s467_s1 + $0x10] sm:$0xff]  ;;  %v30_v2 = vld [vmem:[%s467_s1 + $0x8] sm:$0xff]  ;;  %303 = vset.pattern.permute.xlu2 %v354_v3  ;;  %301 = vset.pattern.permute.xlu1 %v354_v3 }
   0x2   :  { %299 = vset.pattern.permute.xlu0 %v354_v3  ;;  %45 = vperm.xlu1 %301, %v31_v1  }
   0x3   :  { %50 = vperm.xlu0 %299, %v32_v0   ;;  %40 = vperm.xlu2 %303, %v30_v2  }
   0x4   :  { %13 = vsyncpa [#allocation4], 0  ;;  %v355_v4 = vmov 1   ;;  %v29_v5 = vld [vmem:[%s467_s1] sm:$0xff]  ;;  %v86_v6 = vld [vmem:[%s468_s2 + $0x18] sm:$0xff]  ;;  %vm147_vm0 = vcmask 261120  }
   0x5   :  { %v85_v7 = vld [vmem:[%s468_s2 + $0x10] sm:$0xff]  ;;  %v83_v8 = vld [vmem:[%s468_s2] sm:$0xff]  ;;  %v84_v9 = vld [vmem:[%s468_s2 + $0x8] sm:$0xff]  ;;  %vm225_vm1 = vcmask 64512   ;;  %s356_s16 = smov [#allocation3]   ;;  %vm261_vm5 = vcmask 57344  }
   0x6   :  { %v123_v10 = vld [vmem:[%s470_s4] sm:$0xff]  ;;  %v124_v12 = vld [vmem:[%s470_s4 + $0x8] sm:$0xff]  ;;  %v125_v13 = vld [vmem:[%s470_s4 + $0x10] sm:$0xff]  ;;  %s268_s1 = sshll.u32 %s356_s16, 4  ;;  %s269_s1 = int_to_ptr.vmem [resolvable:$true] %s268_s1 }
   0x7   :  { %v197_v11 = vld [vmem:[%s471_s5] sm:$0xff]  ;;  %v200_v14 = vld [vmem:[%s471_s5 + $0x18] sm:$0xff]  ;;  %v198_v16 = vld [vmem:[%s471_s5 + $0x8] sm:$0xff] }
   0x8   :  { %v126_v15 = vld [vmem:[%s470_s4 + $0x18] sm:$0xff]  ;;  %v199_v17 = vld [vmem:[%s471_s5 + $0x10] sm:$0xff]  ;;  %v28_v24 = vld [vmem:[%s466_s0] sm:$0x3] }
   0x9   :  { %v74_v25 = vperm.slane %v28_v24, 1  ;;  %v53_v26 = vperm.slane %v28_v24, 0  ;;  %v119_v57 = vld [vmem:[%s469_s3] sm:$0xff]  ;;  %v120_v58 = vld [vmem:[%s469_s3 + $0x8] sm:$0xff]  ;;  %v121_v59 = vld [vmem:[%s469_s3 + $0x10] sm:$0xff] }
   0xa   :  { %302 = vset.pattern.permute.xlu1 %v355_v4  ;;  %v122_v60 = vld [vmem:[%s469_s3 + $0x18] sm:$0xff] }
   0xb   :  { %300 = vset.pattern.permute.xlu0 %v355_v4  ;;  %304 = vset.pattern.permute.xlu2 %v355_v4 }
   0xc   :  { %71 = vperm.xlu0 %300, %v32_v0   ;;  %67 = vperm.xlu1 %302, %v31_v1  }
   0xd   :  { %63 = vperm.xlu2 %304, %v30_v2  }
  0x14   :  { %305 = vset.pattern.permute.xlu1 %v354_v3  ;;  %59 = vperm.xlu0 %300, %v29_v5  }
  0x15   :  { %306 = vset.pattern.permute.xlu2 %v354_v3  ;;  %104 = vperm.xlu1 %305, %v86_v6  }
  0x16   :  { %35 = vperm.xlu2 %306, %v29_v5  }
  0x1c   :  { %307 = vset.pattern.permute.xlu0 %v354_v3 }
  0x1d   :  { %99 = vperm.xlu1 %305, %v85_v7   ;;  %89 = vperm.xlu0 %307, %v83_v8  }
  0x1e   :  { %94 = vperm.xlu2 %306, %v84_v9  }
  0x25   :  { %129 = vperm.xlu1 %305, %v123_v10   ;;  %203 = vperm.xlu0 %307, %v197_v11  }
  0x26   :  { %134 = vperm.xlu2 %306, %v124_v12  }
  0x2d   :  { %139 = vperm.xlu1 %305, %v125_v13   ;;  %218 = vperm.xlu0 %307, %v200_v14  }
  0x2e   :  { %144 = vperm.xlu2 %306, %v126_v15  }
  0x35   :  { %208 = vperm.xlu1 %305, %v198_v16  }
  0x36   :  { %213 = vperm.xlu2 %306, %v199_v17  }
  0x5d   :  { %v41_v18 = vpop.permute.xlu2 %40 }
  0x5e   :  { %v55_v30 = vmul.f32 %v53_v26, %v41_v18 }
  0x67   :  { %v64_v21 = vpop.permute.xlu2 %63 }
  0x68   :  { %v76_v31 = vmul.f32 %v74_v25, %v64_v21 }
  0x6a   :  { %v80_v36 = vadd.f32 %v76_v31, %v55_v30 }
  0x70   :  { %v36_v27 = vpop.permute.xlu2 %35 }
  0x71   :  { %v54_v37 = vmul.f32 %v53_v26, %v36_v27 }
  0x74   :  { %v46_v19 = vpop.permute.xlu1 %45 }
  0x75   :  { %v51_v20 = vpop.permute.xlu0 %50  ;;  %v56_v40 = vmul.f32 %v53_v26, %v46_v19 }
  0x76   :  { %v57_v29 = vmul.f32 %v53_v26, %v51_v20 }
  0x78   :  { %v95_v41 = vpop.permute.xlu2 %94 }
  0x79   :  { %v108_v42 = vadd.f32 %v95_v41, %v80_v36 }
  0x7e   :  { %v72_v22 = vpop.permute.xlu0 %71  ;;  %v68_v23 = vpop.permute.xlu1 %67 }
  0x7f   :  { %v78_v28 = vmul.f32 %v74_v25, %v72_v22  ;;  %v77_v38 = vmul.f32 %v74_v25, %v68_v23 }
  0x80   :  { %v135_v62 = vpop.permute.xlu2 %134 }
  0x81   :  { %v82_v33 = vadd.f32 %v78_v28, %v57_v29  ;;  %v81_v43 = vadd.f32 %v77_v38, %v56_v40 }
  0x86   :  { %v60_v32 = vpop.permute.xlu0 %59 }
  0x87   :  { %v105_v34 = vpop.permute.xlu1 %104  ;;  %v75_v39 = vmul.f32 %v74_v25, %v60_v32 }
  0x88   :  { %v110_v35 = vadd.f32 %v105_v34, %v82_v33  ;;  %v145_v4 = vpop.permute.xlu2 %144 }
  0x89   :  { %v79_v44 = vadd.f32 %v75_v39, %v54_v37  ;;  %v240_v37 = vstv %s472_s6  ;;  %s270_s6 = sshll.u32 %s473_s7, 4  ;;  %s271_s6 = int_to_ptr.hbm [resolvable:$true] %s270_s6 }
  0x8a   :  { %308 = vtanh.f32 %v110_v35 }
  0x8b   :  { %310 = vtanh.f32 %v108_v42 }
  0x8f   :  { %v100_v45 = vpop.permute.xlu1 %99  ;;  %v90_v46 = vpop.permute.xlu0 %89 }
  0x90   :  { %v309_v47 = vpop.eup %308  ;;  %v109_v48 = vadd.f32 %v100_v45, %v81_v43  ;;  %v107_v49 = vadd.f32 %v90_v46, %v79_v44  ;;  %v214_v22 = vpop.permute.xlu2 %213 }
  0x91   :  { %v118_v50 = vmax.f32 %v309_v47, 0.0  ;;  %v311_v51 = vpop.eup %310 }
  0x92   :  { %312 = vtanh.f32 %v109_v48  ;;  %v116_v55 = vmax.f32 %v311_v51, 0.0 }
  0x93   :  { %172 = vmatpush.msra.mxu0 %v118_v50  ;;  %284 = vmatpush.msra.mxu1 %v118_v50  ;;  %314 = vtanh.f32 %v107_v49 }
  0x94   :  { %285 = vmatpush.msra.mxu2 %v118_v50  ;;  %286 = vmatpush.msra.mxu3 %v118_v50 }
  0x97   :  { %v130_v61 = vpop.permute.xlu1 %129  ;;  %v204_v10 = vpop.permute.xlu0 %203 }
  0x98   :  { %v313_v52 = vpop.eup %312 }
  0x99   :  { %v117_v53 = vmax.f32 %v313_v52, 0.0  ;;  %v315_v54 = vpop.eup %314 }
  0x9a   :  { %v115_v56 = vmax.f32 %v315_v54, 0.0 }
  0x9b   :  { %173 = vmatpush.msra.mxu0 %v117_v53  ;;  %287 = vmatpush.msra.mxu1 %v117_v53 }
  0x9c   :  { %288 = vmatpush.msra.mxu2 %v117_v53  ;;  %289 = vmatpush.msra.mxu3 %v117_v53 }
  0x9d   :  { %174 = vmatpush.msra.mxu0 %v116_v55  ;;  %290 = vmatpush.msra.mxu1 %v116_v55 }
  0x9e   :  { %291 = vmatpush.msra.mxu2 %v116_v55  ;;  %292 = vmatpush.msra.mxu3 %v116_v55 }
  0x9f   :  { %175 = vmatpush.msra.mxu0 %v115_v56  ;;  %293 = vmatpush.msra.mxu1 %v115_v56  ;;  %v140_v3 = vpop.permute.xlu1 %139  ;;  %v219_v24 = vpop.permute.xlu0 %218 }
  0xa0   :  { %294 = vmatpush.msra.mxu2 %v115_v56  ;;  %295 = vmatpush.msra.mxu3 %v115_v56 }
  0xa1   :  { %279 = vmatmul.msk.f32.vlgmr.msra.gmra.mxu0 %vm147_vm0, %v119_v57  ;;  %280 = vmatmul.msk.f32.vlgmr.msra.gmra.mxu1 %vm147_vm0, %v120_v58 }
  0xa2   :  { %281 = vmatmul.msk.f32.vlgmr.msra.gmra.mxu2 %vm147_vm0, %v121_v59  ;;  %282 = vmatmul.msk.f32.vlgmr.msra.gmra.mxu3 %vm147_vm0, %v122_v60 }
  0xa7   :  { %v209_v14 = vpop.permute.xlu1 %208 }
 0x11e   :  { %v177_v63 = vpop.f32.mrf.mxu0  ;;  %v180_v0 = vpop.f32.mrf.mxu1 }
 0x11f   :  { %v178_v1 = vadd.f32 %v177_v63, %v130_v61  ;;  %v181_v2 = vadd.f32 %v180_v0, %v135_v62 }
 0x121   :  { %316 = vtanh.f32 %v178_v1 }
 0x122   :  { %318 = vtanh.f32 %v181_v2 }
 0x125   :  { %v183_v5 = vpop.f32.mrf.mxu2  ;;  %v186_v6 = vpop.f32.mrf.mxu3 }
 0x126   :  { %v184_v7 = vadd.f32 %v183_v5, %v140_v3  ;;  %v187_v8 = vadd.f32 %v186_v6, %v145_v4 }
 0x127   :  { %v317_v9 = vpop.eup %316 }
 0x128   :  { %v319_v11 = vpop.eup %318  ;;  %v193_v12 = vmax.f32 %v317_v9, 0.0  ;;  %320 = vtanh.f32 %v184_v7 }
 0x129   :  { %v194_v13 = vmax.f32 %v319_v11, 0.0  ;;  %322 = vtanh.f32 %v187_v8 }
 0x12a   :  { %v221_v15 = vmul.f32 %v204_v10, %v193_v12 }
 0x12b   :  { %v222_v16 = vmul.f32 %v209_v14, %v194_v13 }
 0x12c   :  { %v226_v19 = vsel %vm225_vm1, %v221_v15, 0.0 }
 0x12d   :  { %v227_v20 = vsel %vm225_vm1, %v222_v16, 0.0 }
 0x12e   :  { %v321_v17 = vpop.eup %320  ;;  %v228_v26 = vadd.f32 %v227_v20, %v226_v19 }
 0x12f   :  { %v323_v18 = vpop.eup %322  ;;  %v195_v21 = vmax.f32 %v321_v17, 0.0 }
 0x130   :  { %v196_v23 = vmax.f32 %v323_v18, 0.0 }
 0x131   :  { %v223_v25 = vmul.f32 %v214_v22, %v195_v21 }
 0x132   :  { %v224_v27 = vmul.f32 %v219_v24, %v196_v23 }
 0x133   :  { %v229_v28 = vsel %vm225_vm1, %v223_v25, 0.0 }
 0x134   :  { %v230_v29 = vadd.f32 %v229_v28, %v228_v26  ;;  %v231_v30 = vsel %vm225_vm1, %v224_v27, 0.0 }
 0x136   :  { %v232_v31 = vadd.f32 %v231_v30, %v230_v29 }
 0x138   :  { %v233_v32 = vrot.slane %v232_v31, 4 }
 0x13a   :  { %v234_v33 = vadd.f32 %v233_v32, %v232_v31 }
 0x13c   :  { %v235_v34 = vrot.slane %v234_v33, 2 }
 0x13e   :  { %v236_v35 = vadd.f32 %v235_v34, %v234_v33 }
 0x140   :  { %v237_v36 = vrot.slane %v236_v35, 1 }
 0x142   :  { %v238_v38 = vadd.f32 %v237_v36, %v236_v35 }
 0x144   :  { %v241_v39 = vadd.f32 %v240_v37, %v238_v38 }
 0x146   :  { %v283_v40 = vmul.f32 -1.442695, %v241_v39 }
 0x148   :  { %324 = vpow2.f32 %v283_v40 }
 0x14e   :  { %v325_v41 = vpop.eup %324 }
 0x14f   :  { %v245_v42 = vadd.f32 1.0, %v325_v41 }
 0x151   :  { %326 = vrcp.f32 %v245_v42  ;;  %v257_v46 = vand.u32 2147483648, %v245_v42  ;;  %v255_v48 = vand.u32 2147483647, %v245_v42  ;;  %vm251_vm3 = vweird.f32 %v245_v42 }
 0x153   :  { %v258_v50 = vor.u32 1.1754944e-38, %v257_v46  ;;  %vm256_vm6 = vcmp.eq.f32.partialorder %v255_v48, 8.507059e+37 }
 0x157   :  { %v327_v43 = vpop.eup %326 }
 0x158   :  { %v247_v44 = vmul.f32 %v327_v43, %v245_v42  ;;  %vm252_vm2 = vweird.f32 %v327_v43 }
 0x159   :  { %vm253_vm4 = vmor %vm251_vm3, %vm252_vm2 }
 0x15a   :  { %v248_v45 = vsub.f32 1.0, %v247_v44 }
 0x15c   :  { %v249_v47 = vmul.f32 %v327_v43, %v248_v45 }
 0x15e   :  { %v250_v49 = vadd.f32 %v327_v43, %v249_v47 }
 0x160   :  { %v254_v51 = vsel %vm253_vm4, %v327_v43, %v250_v49 }
 0x161   :  { %v259_v52 = vsel %vm256_vm6, %v258_v50, %v254_v51 }
 0x162   :  { %262 = vst.msk [vmem:[#allocation3] sm:$0x1] %vm261_vm5, %v259_v52 }
 0x163   :  { %273 = dma.vmem_to_hbm [thread:$0]  %s269_s1, 16, %s271_s6, [#allocation4]  }
 0x164   :  { %352 = dma.done.wait [#allocation4], 16  }
 0x165   :  { %353 = vsyncadd [#allocation4], 4294967280 }
 0x166   :  { %278 = vsyncpa [#allocation4], 1 }

</bundles_post_ra>
